<compile_context>
chip_gen: v5e
topology: v5e:2x2
jax: 0.10.0
libtpu: 0.0.40
codegen_flags: <defaults>
</compile_context>

<pallas_src>
import math

import jax
import jax.numpy as jnp
from jax import lax
from jax.experimental import pallas as pl
from jax.experimental.pallas import tpu as pltpu


def _round_up(x, m):
    return (x + m - 1) // m * m


# ----------------------------- Pallas kernel --------------------------------
def _matmul_bias_relu_kernel(p_ref, w_ref, b_ref, o_ref):
    # p_ref: (TILE_M, K) patches, w_ref: (K, C_pad), b_ref: (1, C_pad) f32.
    acc = jnp.dot(p_ref[...], w_ref[...], preferred_element_type=jnp.float32)
    acc = acc + b_ref[...]                       # f32 bias add (VPU filler)
    o_ref[...] = jnp.maximum(acc, 0.0).astype(o_ref.dtype)


def conv2d_relu_pallas(x_nhwc, w2d, b2d, stride, ksize, c_out,
                       *, compute_dtype=jnp.bfloat16, tile_m=512):
    """One Conv2d(valid padding, square kernel/stride) + ReLU layer, NHWC in/out.

    x_nhwc: (N, H, W, C_in)
    w2d:    (K, C_pad) with K = KH*KW*C_in (tap-major, C_in minor), C_pad % 128 == 0
    b2d:    (1, C_pad) float32
    Returns (N, OH, OW, c_out) in `compute_dtype`.
    """
    N, H, W, C_in = x_nhwc.shape
    KH = KW = ksize
    OH = (H - KH) // stride + 1
    OW = (W - KW) // stride + 1

    # ---- glue: im2col, materialized directly in the narrow compute dtype ----
    # TODO(synk): replace the XLA-side im2col with an in-kernel KH*KW tap
    # accumulation loop (strided NHWC window loads) to kill the ~KH*KW x HBM
    # blow-up entirely; kept in XLA (bf16 halves it) for lowering robustness
    # at lane-sparse C_in.
    xc = x_nhwc.astype(compute_dtype)
    patches = [xc[:, i:i + stride * OH:stride, j:j + stride * OW:stride, :]
               for i in range(KH) for j in range(KW)]
    p = jnp.stack(patches, axis=3)                 # (N, OH, OW, KH*KW, C_in)
    p = p.reshape(N * OH * OW, KH * KW * C_in)     # K index = tap*C_in + c

    M, K = p.shape
    C_pad = w2d.shape[1]
    assert C_pad % 128 == 0 and w2d.shape[0] == K

    # Tile granularity 16 keeps sub-32-bit sublane packing legal (and 16 % 8 == 0
    # so f32 unit checks use the same path).
    TILE_M = min(tile_m, _round_up(M, 16))
    M_pad = _round_up(M, TILE_M)
    if M_pad != M:
        p = jnp.pad(p, ((0, M_pad - M), (0, 0)))
    grid_m = M_pad // TILE_M

    w2d = w2d.astype(compute_dtype)
    b2d = b2d.astype(jnp.float32)

    in_item = jnp.dtype(compute_dtype).itemsize
    cost = pl.CostEstimate(
        flops=2 * M_pad * K * C_pad,
        transcendentals=0,
        bytes_accessed=(M_pad * K * in_item + K * C_pad * in_item
                        + C_pad * 4 + M_pad * C_pad * in_item),
    )

    out = pl.pallas_call(
        _matmul_bias_relu_kernel,
        out_shape=jax.ShapeDtypeStruct((M_pad, C_pad), compute_dtype),
        grid=(grid_m,),
        in_specs=[
            pl.BlockSpec((TILE_M, K), lambda i: (i, 0)),   # patches: tiled over M
            pl.BlockSpec((K, C_pad), lambda i: (0, 0)),    # weights: resident
            pl.BlockSpec((1, C_pad), lambda i: (0, 0)),    # bias: resident
        ],
        out_specs=pl.BlockSpec((TILE_M, C_pad), lambda i: (i, 0)),
        compiler_params=pltpu.CompilerParams(
            dimension_semantics=("parallel",),
            vmem_limit_bytes=64 * 1024 * 1024,
        ),
        cost_estimate=cost,
    )(p, w2d, b2d)

    out = out[:M, :c_out]                          # drop pad rows / pad lanes
    return out.reshape(N, OH, OW, c_out)


def pack_conv_params(weight, bias, compute_dtype):
    """OIHW weight (C_out, C_in, KH, KW) + bias -> lane-padded matmul operands."""
    C_out, C_in, KH, KW = weight.shape
    C_pad = _round_up(C_out, 128)
    # OIHW -> (KH, KW, C_in, C_out) -> (K, C_out); matches patch K ordering.
    w2d = jnp.transpose(weight, (2, 3, 1, 0)).reshape(KH * KW * C_in, C_out)
    w2d = jnp.pad(w2d, ((0, 0), (0, C_pad - C_out))).astype(compute_dtype)
    b2d = jnp.pad(bias.reshape(1, C_out), ((0, 0), (0, C_pad - C_out)))
    return w2d, b2d.astype(jnp.float32)


# ------------------------------ Conv module ---------------------------------
class ConvPallas:
    """JAX/Pallas port of the PyTorch `Conv` module (NCHW in, flat NCHW-order out)."""

    def __init__(self, input_size, channels, kernel_size, stride, key,
                 compute_dtype=jnp.bfloat16, tile_m=512):
        assert len(channels) == len(kernel_size) == len(stride)
        self.strides = list(stride)
        self.ksizes = list(kernel_size)
        self.channels = list(channels)
        self.compute_dtype = compute_dtype
        self.tile_m = tile_m
        self.params = []   # torch-layout (OIHW) f32 params (for reference checks)
        self.packed = []   # (w2d lane-padded compute_dtype, b2d lane-padded f32)

        c_ins = [input_size[0]] + list(channels[:-1])
        for c_in, c_out, k in zip(c_ins, channels, kernel_size):
            key, kw_, kb_ = jax.random.split(key, 3)
            fan_in = c_in * k * k
            bound = 1.0 / math.sqrt(fan_in)   # PyTorch default Conv2d init range
            w = jax.random.uniform(kw_, (c_out, c_in, k, k), jnp.float32,
                                   -bound, bound)
            b = jax.random.uniform(kb_, (c_out,), jnp.float32, -bound, bound)
            self.params.append((w, b))
            self.packed.append(pack_conv_params(w, b, compute_dtype))

        # Same value torch's zero-input probe produces, computed analytically
        # (avoids an extra batch-1 trace/compile at construction time).
        h, w = int(input_size[1]), int(input_size[2])
        for k, s in zip(kernel_size, stride):
            h = (h - k) // s + 1
            w = (w - k) // s + 1
        self.output_size = int(channels[-1] * h * w)

    def forward(self, x_nchw):
        out_dtype = x_nchw.dtype
        # one transpose in, layers stay NHWC/bf16, one transpose out before flatten
        x = jnp.transpose(x_nchw, (0, 2, 3, 1))
        for (w2d, b2d), s, k, c_out in zip(self.packed, self.strides,
                                           self.ksizes, self.channels):
            x = conv2d_relu_pallas(x, w2d, b2d, s, k, c_out,
                                   compute_dtype=self.compute_dtype,
                                   tile_m=self.tile_m)
        x = jnp.transpose(x, (0, 3, 1, 2))   # NCHW so flatten matches torch .view
        return x.reshape(x.shape[0], -1).astype(out_dtype)


# ----------------------------- reference check ------------------------------
def _reference_forward(x, params, strides, compute_dtype):
    """Pure-JAX reference with matching narrow-storage / f32-accumulate numerics."""
    out_dtype = x.dtype
    for (w, b), s in zip(params, strides):
        y = lax.conv_general_dilated(
            x.astype(compute_dtype), w.astype(compute_dtype),
            window_strides=(s, s), padding="VALID",
            dimension_numbers=("NCHW", "OIHW", "NCHW"),
            preferred_element_type=jnp.float32)
        x = jnp.maximum(y + b[None, :, None, None], 0.0).astype(compute_dtype)
    return x.reshape(x.shape[0], -1).astype(out_dtype)


if __name__ == "__main__":
    key = jax.random.PRNGKey(0)
    k_model, k_x = jax.random.split(key)

    input_size = (4, 16, 16)          # (C, H, W)
    channels = [8, 16]
    kernel_size = [3, 3]
    stride = [2, 2]
    batch = 2

    model = ConvPallas(input_size, channels, kernel_size, stride, k_model,
                       compute_dtype=jnp.bfloat16)

    x = jax.random.normal(k_x, (batch,) + input_size, jnp.float32)

    out = jax.block_until_ready(jax.jit(model.forward)(x))
    assert out.shape == (batch, model.output_size)

    # --- check 1: tight f32 unit check of the fused Pallas kernel (layer 1) ---
    w0, b0 = model.params[0]
    w2d_f32, b2d_f32 = pack_conv_params(w0, b0, jnp.float32)
    x_nhwc = jnp.transpose(x, (0, 2, 3, 1))
    y_pallas = jax.block_until_ready(
        conv2d_relu_pallas(x_nhwc, w2d_f32, b2d_f32, stride[0], kernel_size[0],
                           channels[0], compute_dtype=jnp.float32))
    y_ref = lax.conv_general_dilated(
        x, w0, window_strides=(stride[0], stride[0]), padding="VALID",
        dimension_numbers=("NCHW", "OIHW", "NCHW"))
    y_ref = jnp.maximum(y_ref + b0[None, :, None, None], 0.0)
    y_ref = jnp.transpose(y_ref, (0, 2, 3, 1))
    assert jnp.allclose(y_pallas.astype(jnp.float32), y_ref, atol=1e-4, rtol=1e-4)

    # --- check 2: full stack (bf16 inputs / f32 acc / bf16 storage) vs reference ---
    ref = jax.block_until_ready(
        _reference_forward(x, model.params, model.strides, jnp.bfloat16))
    assert jnp.allclose(out, ref, atol=1e-2, rtol=1e-2)

    print("KERNEL_OK")
</pallas_src>

<mosaic_0001>
module attributes {stable_mosaic.version = 11 : i64} {
  func.func @_matmul_bias_relu_kernel(%arg0: i32, %arg1: memref<112x36xbf16, #tpu.memory_space<vmem>>, %arg2: memref<36x128xbf16, #tpu.memory_space<vmem>>, %arg3: memref<1x128xf32, #tpu.memory_space<vmem>>, %arg4: memref<112x128xbf16, #tpu.memory_space<vmem>>) attributes {dimension_semantics = [#tpu.dimension_semantics<parallel>], iteration_bounds = array<i64: 1>, scalar_prefetch = 0 : i64, scratch_operands = 0 : i64, tpu.core_type = #tpu.core_type<tc>, window_params = [{transform_indices = @transform_0, window_bounds = array<i64: 112, 36>}, {pipeline_mode = #tpu.pipeline_mode<synchronous>, transform_indices = @transform_1, window_bounds = array<i64: 36, 128>}, {pipeline_mode = #tpu.pipeline_mode<synchronous>, transform_indices = @transform_2, window_bounds = array<i64: 1, 128>}, {transform_indices = @transform_3, window_bounds = array<i64: 112, 128>}]} {
    %c0 = arith.constant 0 : index
    %c0_0 = arith.constant 0 : index
    %0 = vector.load %arg1[%c0, %c0_0] : memref<112x36xbf16, #tpu.memory_space<vmem>>, vector<112x36xbf16>
    %c0_1 = arith.constant 0 : index
    %c0_2 = arith.constant 0 : index
    %1 = vector.load %arg2[%c0_1, %c0_2] : memref<36x128xbf16, #tpu.memory_space<vmem>>, vector<36x128xbf16>
    %cst = arith.constant dense<0.000000e+00> : vector<112x128xf32>
    %2 = tpu.matmul %0, %1, %cst {dimension_numbers = #tpu.dot_dimension_numbers<[1], [0], [0], [1], [0, 0, 1, 1], [], []>} : vector<112x36xbf16>, vector<36x128xbf16>, vector<112x128xf32> -> vector<112x128xf32>
    %c0_3 = arith.constant 0 : index
    %c0_4 = arith.constant 0 : index
    %3 = vector.load %arg3[%c0_3, %c0_4] : memref<1x128xf32, #tpu.memory_space<vmem>>, vector<1x128xf32>
    %4 = vector.broadcast %3 : vector<1x128xf32> to vector<112x128xf32>
    %5 = arith.addf %2, %4 : vector<112x128xf32>
    %cst_5 = arith.constant 0.000000e+00 : f32
    %6 = vector.broadcast %cst_5 : f32 to vector<112x128xf32>
    %7 = arith.maximumf %5, %6 : vector<112x128xf32>
    %8 = arith.truncf %7 : vector<112x128xf32> to vector<112x128xbf16>
    %c0_6 = arith.constant 0 : index
    %c0_7 = arith.constant 0 : index
    %9 = vector.load %arg4[%c0_6, %c0_7] : memref<112x128xbf16, #tpu.memory_space<vmem>>, vector<112x128xbf16>
    tpu.vector_store %arg4[%c0_6, %c0_7], %8 {strides = array<i32>} : memref<112x128xbf16, #tpu.memory_space<vmem>>, vector<112x128xbf16>,
    return
  }
  func.func @transform_0(%arg0: i32) -> (i32, i32) {
    %c0_i32 = arith.constant 0 : i32
    %c0_i32_0 = arith.constant 0 : i32
    return %arg0, %c0_i32 : i32, i32
  }
  func.func @transform_1(%arg0: i32) -> (i32, i32) {
    %c0_i32 = arith.constant 0 : i32
    %c0_i32_0 = arith.constant 0 : i32
    %c0_i32_1 = arith.constant 0 : i32
    return %c0_i32, %c0_i32_0 : i32, i32
  }
  func.func @transform_2(%arg0: i32) -> (i32, i32) {
    %c0_i32 = arith.constant 0 : i32
    %c0_i32_0 = arith.constant 0 : i32
    %c0_i32_1 = arith.constant 0 : i32
    return %c0_i32, %c0_i32_0 : i32, i32
  }
  func.func @transform_3(%arg0: i32) -> (i32, i32) {
    %c0_i32 = arith.constant 0 : i32
    %c0_i32_0 = arith.constant 0 : i32
    return %arg0, %c0_i32 : i32, i32
  }
}

module attributes {stable_mosaic.version = 11 : i64} {
  func.func @_matmul_bias_relu_kernel(%arg0: i32, %arg1: memref<32x72xbf16, #tpu.memory_space<vmem>>, %arg2: memref<72x128xbf16, #tpu.memory_space<vmem>>, %arg3: memref<1x128xf32, #tpu.memory_space<vmem>>, %arg4: memref<32x128xbf16, #tpu.memory_space<vmem>>) attributes {dimension_semantics = [#tpu.dimension_semantics<parallel>], iteration_bounds = array<i64: 1>, scalar_prefetch = 0 : i64, scratch_operands = 0 : i64, tpu.core_type = #tpu.core_type<tc>, window_params = [{transform_indices = @transform_0, window_bounds = array<i64: 32, 72>}, {pipeline_mode = #tpu.pipeline_mode<synchronous>, transform_indices = @transform_1, window_bounds = array<i64: 72, 128>}, {pipeline_mode = #tpu.pipeline_mode<synchronous>, transform_indices = @transform_2, window_bounds = array<i64: 1, 128>}, {transform_indices = @transform_3, window_bounds = array<i64: 32, 128>}]} {
    %c0 = arith.constant 0 : index
    %c0_0 = arith.constant 0 : index
    %0 = vector.load %arg1[%c0, %c0_0] : memref<32x72xbf16, #tpu.memory_space<vmem>>, vector<32x72xbf16>
    %c0_1 = arith.constant 0 : index
    %c0_2 = arith.constant 0 : index
    %1 = vector.load %arg2[%c0_1, %c0_2] : memref<72x128xbf16, #tpu.memory_space<vmem>>, vector<72x128xbf16>
    %cst = arith.constant dense<0.000000e+00> : vector<32x128xf32>
    %2 = tpu.matmul %0, %1, %cst {dimension_numbers = #tpu.dot_dimension_numbers<[1], [0], [0], [1], [0, 0, 1, 1], [], []>} : vector<32x72xbf16>, vector<72x128xbf16>, vector<32x128xf32> -> vector<32x128xf32>
    %c0_3 = arith.constant 0 : index
    %c0_4 = arith.constant 0 : index
    %3 = vector.load %arg3[%c0_3, %c0_4] : memref<1x128xf32, #tpu.memory_space<vmem>>, vector<1x128xf32>
    %4 = vector.broadcast %3 : vector<1x128xf32> to vector<32x128xf32>
    %5 = arith.addf %2, %4 : vector<32x128xf32>
    %cst_5 = arith.constant 0.000000e+00 : f32
    %6 = vector.broadcast %cst_5 : f32 to vector<32x128xf32>
    %7 = arith.maximumf %5, %6 : vector<32x128xf32>
    %8 = arith.truncf %7 : vector<32x128xf32> to vector<32x128xbf16>
    %c0_6 = arith.constant 0 : index
    %c0_7 = arith.constant 0 : index
    %9 = vector.load %arg4[%c0_6, %c0_7] : memref<32x128xbf16, #tpu.memory_space<vmem>>, vector<32x128xbf16>
    tpu.vector_store %arg4[%c0_6, %c0_7], %8 {strides = array<i32>} : memref<32x128xbf16, #tpu.memory_space<vmem>>, vector<32x128xbf16>,
    return
  }
  func.func @transform_0(%arg0: i32) -> (i32, i32) {
    %c0_i32 = arith.constant 0 : i32
    %c0_i32_0 = arith.constant 0 : i32
    return %arg0, %c0_i32 : i32, i32
  }
  func.func @transform_1(%arg0: i32) -> (i32, i32) {
    %c0_i32 = arith.constant 0 : i32
    %c0_i32_0 = arith.constant 0 : i32
    %c0_i32_1 = arith.constant 0 : i32
    return %c0_i32, %c0_i32_0 : i32, i32
  }
  func.func @transform_2(%arg0: i32) -> (i32, i32) {
    %c0_i32 = arith.constant 0 : i32
    %c0_i32_0 = arith.constant 0 : i32
    %c0_i32_1 = arith.constant 0 : i32
    return %c0_i32, %c0_i32_0 : i32, i32
  }
  func.func @transform_3(%arg0: i32) -> (i32, i32) {
    %c0_i32 = arith.constant 0 : i32
    %c0_i32_0 = arith.constant 0 : i32
    return %arg0, %c0_i32 : i32, i32
  }
}

</mosaic_0001>

<bundles_post_ra>
// kernel: forward.2
= control target key start
LH: loop header
LB: loop body
LE: loop exit
PB: predicated region body
PF: predicated region fallthrough
CT: control target
= control target key end

     0   :  { %vm110_vm0 = vcmask 1041408   ;;  %vm88_vm1 = vcmask 293888   ;;  %s381_s1 = inlined_call_operand.vmem [shape: bf16[36,128], index: 1, kind: input, shape index: {}]   ;;  %s382_s2 = inlined_call_operand.vmem [shape: f32[1,128], index: 2, kind: input, shape index: {}]   ;;  %s383_s0 = inlined_call_operand.vmem [shape: bf16[112,36], index: 0, kind: input, shape index: {}]   ;;  %s384_s3 = inlined_call_operand.vmem [shape: bf16[112,128], index: 3, kind: output, shape index: {}]  }
   0x1   :  { %v33_v0 = vld [vmem:[%s381_s1 + $0x10] sm:$0x3]  ;;  %v255_v4 = vld [vmem:[%s381_s1 + $0x8] sm:$0xff]  ;;  %v254_v5 = vld [vmem:[%s381_s1] sm:$0xff] }
   0x2   :  { %v82_v1 = vunpack.c.l.b16 %v33_v0  ;;  %v247_v6 = vld [vmem:[%s383_s0] sm:$0xff]  ;;  %v249_v7 = vld [vmem:[%s383_s0 + $0x10] sm:$0xff]  ;;  %v252_v8 = vld [vmem:[%s383_s0 + $0x28] sm:$0xff] }
   0x3   :  { %v251_v9 = vld [vmem:[%s383_s0 + $0x20] sm:$0xff]  ;;  %v248_v10 = vld [vmem:[%s383_s0 + $0x8] sm:$0xff]  ;;  %v250_v11 = vld [vmem:[%s383_s0 + $0x18] sm:$0xff] }
   0x4   :  { %v85_v2 = vpack.c.b16 %v82_v1, %v82_v1  ;;  %v253_v12 = vld [vmem:[%s383_s0 + $0x30] sm:$0xff]  ;;  %v306_v15 = vld [vmem:[%s382_s2] ss:$0 sm:$0xff] }
   0x6   :  { %v112_v3 = vsel %vm110_vm0, %v85_v2, 0 }
   0x7   :  { %119 = vmatpush.bf16.msra.mxu0 %v112_v3  ;;  %297 = vmatpush.bf16.msra.mxu1 %v112_v3 }
   0x8   :  { %299 = vmatpush.bf16.msra.mxu3 %v112_v3  ;;  %298 = vmatpush.bf16.msra.mxu2 %v112_v3 }
   0xb   :  { %120 = vmatpush.bf16.msra.mxu0 %v255_v4  ;;  %300 = vmatpush.bf16.msra.mxu1 %v255_v4 }
   0xc   :  { %302 = vmatpush.bf16.msra.mxu3 %v255_v4  ;;  %301 = vmatpush.bf16.msra.mxu2 %v255_v4 }
   0xf   :  { %121 = vmatpush.bf16.msra.mxu0 %v254_v5  ;;  %303 = vmatpush.bf16.msra.mxu1 %v254_v5 }
  0x10   :  { %305 = vmatpush.bf16.msra.mxu3 %v254_v5  ;;  %304 = vmatpush.bf16.msra.mxu2 %v254_v5 }
  0x12   :  { %240 = vmatmul.msk.bf16.vlgmr.msra.gmra.mxu0 %vm88_vm1, %v247_v6  ;;  %242 = vmatmul.msk.bf16.vlgmr.msra.gmra.mxu1 %vm88_vm1, %v249_v7 }
  0x13   :  { %245 = vmatmul.msk.bf16.vlgmr.msra.gmra.mxu3 %vm88_vm1, %v252_v8  ;;  %244 = vmatmul.msk.bf16.vlgmr.msra.gmra.mxu2 %vm88_vm1, %v251_v9 }
  0x22   :  { %241 = vmatmul.msk.bf16.gmra.mxu0 %vm88_vm1, %v248_v10  ;;  %243 = vmatmul.msk.bf16.gmra.mxu1 %vm88_vm1, %v250_v11 }
  0x23   :  { %246 = vmatmul.msk.bf16.gmra.mxu3 %vm88_vm1, %v253_v12 }
  0x8f   :  { %v123_v13 = vpop.f32.mrf.mxu0  ;;  %v133_v14 = vpop.f32.mrf.mxu1 }
  0x90   :  { %v124_v16 = vadd.f32 %v306_v15, %v123_v13  ;;  %v134_v17 = vadd.f32 %v306_v15, %v133_v14 }
  0x92   :  { %v158_v24 = vmax.f32 %v124_v16, 0.0  ;;  %v162_v25 = vmax.f32 %v134_v17, 0.0 }
  0x96   :  { %v148_v18 = vpop.f32.mrf.mxu3  ;;  %v143_v19 = vpop.f32.mrf.mxu2 }
  0x97   :  { %v125_v20 = vpop.f32.mrf.mxu0  ;;  %v135_v21 = vpop.f32.mrf.mxu1  ;;  %v144_v28 = vadd.f32 %v306_v15, %v143_v19  ;;  %v149_v31 = vadd.f32 %v306_v15, %v148_v18 }
  0x98   :  { %v126_v22 = vadd.f32 %v306_v15, %v125_v20  ;;  %v136_v23 = vadd.f32 %v306_v15, %v135_v21 }
  0x99   :  { %v166_v34 = vmax.f32 %v144_v28, 0.0  ;;  %v168_v39 = vmax.f32 %v149_v31, 0.0 }
  0x9a   :  { %v159_v26 = vmax.f32 %v126_v22, 0.0  ;;  %v163_v27 = vmax.f32 %v136_v23, 0.0 }
  0x9c   :  { %v259_v29 = vpack.c.bf16 %v159_v26, %v158_v24  ;;  %v269_v30 = vpack.c.bf16 %v163_v27, %v162_v25 }
  0x9e   :  { %260 = vst [vmem:[%s384_s3] sm:$0xff] %v259_v29   ;;  %v150_v32 = vpop.f32.mrf.mxu3  ;;  %v145_v33 = vpop.f32.mrf.mxu2 }
  0x9f   :  { %292 = vst [vmem:[%s384_s3 + $0x10] sm:$0xff] %v269_v30   ;;  %v151_v35 = vadd.f32 %v306_v15, %v150_v32  ;;  %v128_v36 = vpop.f32.mrf.mxu0  ;;  %v138_v37 = vpop.f32.mrf.mxu1  ;;  %v146_v38 = vadd.f32 %v306_v15, %v145_v33 }
  0xa0   :  { %v129_v44 = vadd.f32 %v306_v15, %v128_v36  ;;  %v139_v45 = vadd.f32 %v306_v15, %v138_v37 }
  0xa1   :  { %v169_v40 = vmax.f32 %v151_v35, 0.0  ;;  %v167_v41 = vmax.f32 %v146_v38, 0.0 }
  0xa2   :  { %v160_v51 = vmax.f32 %v129_v44, 0.0  ;;  %v164_v52 = vmax.f32 %v139_v45, 0.0 }
  0xa3   :  { %v284_v42 = vpack.c.bf16 %v169_v40, %v168_v39  ;;  %v279_v43 = vpack.c.bf16 %v167_v41, %v166_v34 }
  0xa5   :  { %295 = vst [vmem:[%s384_s3 + $0x28] sm:$0xff] %v284_v42  }
  0xa6   :  { %294 = vst [vmem:[%s384_s3 + $0x20] sm:$0xff] %v279_v43   ;;  %v153_v46 = vpop.f32.mrf.mxu3 }
  0xa7   :  { %v130_v47 = vpop.f32.mrf.mxu0  ;;  %v140_v48 = vpop.f32.mrf.mxu1  ;;  %v154_v57 = vadd.f32 %v306_v15, %v153_v46 }
  0xa8   :  { %v131_v49 = vadd.f32 %v306_v15, %v130_v47  ;;  %v141_v50 = vadd.f32 %v306_v15, %v140_v48 }
  0xa9   :  { %v170_v60 = vmax.f32 %v154_v57, 0.0 }
  0xaa   :  { %v161_v53 = vmax.f32 %v131_v49, 0.0  ;;  %v165_v54 = vmax.f32 %v141_v50, 0.0 }
  0xac   :  { %v264_v55 = vpack.c.bf16 %v161_v53, %v160_v51  ;;  %v274_v56 = vpack.c.bf16 %v165_v54, %v164_v52 }
  0xae   :  { %291 = vst [vmem:[%s384_s3 + $0x8] sm:$0xff] %v264_v55   ;;  %v155_v58 = vpop.f32.mrf.mxu3 }
  0xaf   :  { %293 = vst [vmem:[%s384_s3 + $0x18] sm:$0xff] %v274_v56   ;;  %v156_v59 = vadd.f32 %v306_v15, %v155_v58 }
  0xb1   :  { %v171_v61 = vmax.f32 %v156_v59, 0.0 }
  0xb3   :  { %v289_v62 = vpack.c.bf16 %v171_v61, %v170_v60 }
  0xb5   :  { %296 = vst [vmem:[%s384_s3 + $0x30] sm:$0xff] %v289_v62  }

// kernel: forward.3
= control target key start
LH: loop header
LB: loop body
LE: loop exit
PB: predicated region body
PF: predicated region fallthrough
CT: control target
= control target key end

     0   :  { %vm76_vm0 = vcmask 1043456   ;;  %vm69_vm1 = vcmask 588800   ;;  %s214_s1 = inlined_call_operand.vmem [shape: bf16[72,128], index: 1, kind: input, shape index: {}]   ;;  %s215_s2 = inlined_call_operand.vmem [shape: f32[1,128], index: 2, kind: input, shape index: {}]   ;;  %s216_s0 = inlined_call_operand.vmem [shape: bf16[32,72], index: 0, kind: input, shape index: {}]   ;;  %s217_s3 = inlined_call_operand.vmem [shape: bf16[32,128], index: 3, kind: output, shape index: {}]  }
   0x1   :  { %v27_v0 = vld [vmem:[%s214_s1 + $0x20] sm:$0xf]  ;;  %v146_v4 = vld [vmem:[%s214_s1 + $0x18] sm:$0xff]  ;;  %v145_v5 = vld [vmem:[%s214_s1 + $0x10] sm:$0xff] }
   0x2   :  { %v59_v1 = vunpack.c.l.b16 %v27_v0  ;;  %v144_v6 = vld [vmem:[%s214_s1 + $0x8] sm:$0xff]  ;;  %v143_v7 = vld [vmem:[%s214_s1] sm:$0xff] }
   0x3   :  { %v141_v8 = vld [vmem:[%s216_s0] sm:$0xff]  ;;  %v142_v9 = vld [vmem:[%s216_s0 + $0x8] sm:$0xff] }
   0x4   :  { %v64_v2 = vpack.c.b16 %v59_v1, %v59_v1  ;;  %v163_v12 = vld [vmem:[%s215_s2] ss:$0 sm:$0xff] }
   0x6   :  { %v78_v3 = vsel %vm76_vm0, %v64_v2, 0 }
   0x7   :  { %83 = vmatpush.bf16.msra.mxu0 %v78_v3  ;;  %158 = vmatpush.bf16.msra.mxu1 %v78_v3 }
   0xb   :  { %84 = vmatpush.bf16.msra.mxu0 %v146_v4  ;;  %159 = vmatpush.bf16.msra.mxu1 %v146_v4 }
   0xf   :  { %85 = vmatpush.bf16.msra.mxu0 %v145_v5  ;;  %160 = vmatpush.bf16.msra.mxu1 %v145_v5 }
  0x13   :  { %86 = vmatpush.bf16.msra.mxu0 %v144_v6  ;;  %161 = vmatpush.bf16.msra.mxu1 %v144_v6 }
  0x17   :  { %87 = vmatpush.bf16.msra.mxu0 %v143_v7  ;;  %162 = vmatpush.bf16.msra.mxu1 %v143_v7 }
  0x1a   :  { %139 = vmatmul.msk.bf16.vlgmr.msra.gmra.mxu0 %vm69_vm1, %v141_v8  ;;  %140 = vmatmul.msk.bf16.vlgmr.msra.gmra.mxu1 %vm69_vm1, %v142_v9 }
  0x97   :  { %v89_v10 = vpop.f32.mrf.mxu0  ;;  %v94_v11 = vpop.f32.mrf.mxu1 }
  0x98   :  { %v90_v13 = vadd.f32 %v163_v12, %v89_v10  ;;  %v95_v14 = vadd.f32 %v163_v12, %v94_v11 }
  0x9a   :  { %v99_v19 = vmax.f32 %v90_v13, 0.0  ;;  %v101_v20 = vmax.f32 %v95_v14, 0.0 }
  0x9f   :  { %v91_v15 = vpop.f32.mrf.mxu0  ;;  %v96_v16 = vpop.f32.mrf.mxu1 }
  0xa0   :  { %v92_v17 = vadd.f32 %v163_v12, %v91_v15  ;;  %v97_v18 = vadd.f32 %v163_v12, %v96_v16 }
  0xa2   :  { %v100_v21 = vmax.f32 %v92_v17, 0.0  ;;  %v102_v22 = vmax.f32 %v97_v18, 0.0 }
  0xa4   :  { %v150_v23 = vpack.c.bf16 %v100_v21, %v99_v19  ;;  %v155_v24 = vpack.c.bf16 %v102_v22, %v101_v20 }
  0xa6   :  { %151 = vst [vmem:[%s217_s3] sm:$0xff] %v150_v23  }
  0xa7   :  { %157 = vst [vmem:[%s217_s3 + $0x8] sm:$0xff] %v155_v24  }

</bundles_post_ra>
